<compile_context>
chip_gen: v7x
topology: tpu7x:2x2x1
jax: 0.10.0
libtpu: 0.0.40
codegen_flags: <defaults>
</compile_context>

<pallas_src>
import jax
import jax.numpy as jnp
from jax.experimental import pallas as pl
from jax.experimental.pallas import tpu as pltpu


def _acnet_kernel(scal_ref,                        # SMEM (3,): K_static, K_domain, Sigma_domain
                  x_ref, xp_ref,                   # activations
                  w1_ref, w2_ref, wo1_ref,         # trunk weights
                  wfold_ref, wfxp_ref, wf2_ref,    # fc1 (u-folded + xp part), fc2
                  wheads_ref,                      # fused (H, 3) head weight [mu, sig, v]
                  bias_ref,                        # (5, H) slab: b1, b2, bf1, bf2, head-bias(padded)
                  out_ref):                        # (B, 3) packed [mu, sigma, v]
    f32 = jnp.float32
    k_static = scal_ref[0]
    k_domain = scal_ref[1]
    sigma_domain = scal_ref[2]

    x = x_ref[...]
    xp = xp_ref[...]
    bias = bias_ref[...]                           # load the slab once

    # hidden1 -> sigmoid
    h = jax.nn.sigmoid(
        jnp.dot(x, w1_ref[...], preferred_element_type=f32) + bias[0:1, :])
    # hidden2 -> sigmoid
    h = jax.nn.sigmoid(
        jnp.dot(h, w2_ref[...], preferred_element_type=f32) + bias[1:2, :])
    # PID gains = K_static + K_domain * tanh(out1(h))   (out1 has no bias)
    pid = k_static + k_domain * jnp.tanh(
        jnp.dot(h, wo1_ref[...], preferred_element_type=f32))

    # fc1(concat(u, x_prime)) with u = pid @ wu folded into the weight:
    #   concat([pid @ wu, xp], 1) @ Wf1 == pid @ (wu @ Wf1[0:1]) + xp @ Wf1[1:3]
    xs = jax.nn.sigmoid(
        jnp.dot(pid, wfold_ref[...], preferred_element_type=f32)
        + jnp.dot(xp, wfxp_ref[...], preferred_element_type=f32)
        + bias[2:3, :])
    # fc2 -> sigmoid
    xs = jax.nn.sigmoid(
        jnp.dot(xs, wf2_ref[...], preferred_element_type=f32) + bias[3:4, :])

    # fused heads: one (B, H) @ (H, 3) matmul + one (1, 3) bias
    heads = (jnp.dot(xs, wheads_ref[...], preferred_element_type=f32)
             + bias[4:5, 0:3])
    # column 0 = mu (linear), column 1 = sigma head, column 2 = v (linear)
    t = jnp.tanh(heads)
    col = jax.lax.broadcasted_iota(jnp.int32, heads.shape, 1)
    out_ref[...] = jnp.where(col == 1, sigma_domain * (1.0 + t), heads)


def actor_critic_forward(x, x_prime, params,
                         K_static=0.0, K_domain=1.0, Sigma_domain=0.01):
    """Runs the ActorCriticNetwork forward pass as a single Pallas kernel."""
    B = x.shape[0]
    H = params["w1"].shape[1]

    # ---- wrapper-level weight prep (tiny, one-time per call / traced once) ----
    scalars = jnp.asarray([K_static, K_domain, Sigma_domain], dtype=jnp.float32)
    # fold u-layer into fc1's u-row:  (3,1) @ (1,H) -> (3,H)
    wfold = params["wu"] @ params["wf1"][0:1, :]
    wfxp = params["wf1"][1:3, :]                                   # (2, H)
    # fuse the three heads: (H, 3) weight, (1, 3) bias
    wheads = jnp.concatenate([params["wmu"], params["wsig"], params["wv"]], axis=1)
    bheads = jnp.concatenate([params["bmu"], params["bsig"], params["bv"]], axis=1)
    bheads_padded = jnp.pad(bheads, ((0, 0), (0, H - 3)))
    bias_slab = jnp.concatenate(
        [params["b1"], params["b2"], params["bf1"], params["bf2"], bheads_padded],
        axis=0)                                                    # (5, H)

    operands = (
        scalars,
        x, x_prime,
        params["w1"], params["w2"], params["wo1"],
        wfold, wfxp, params["wf2"],
        wheads,
        bias_slab,
    )

    smem_spec = pl.BlockSpec(memory_space=pltpu.MemorySpace.SMEM)
    vmem_spec = pl.BlockSpec(memory_space=pltpu.MemorySpace.VMEM)
    in_specs = [smem_spec] + [vmem_spec] * (len(operands) - 1)

    packed = pl.pallas_call(
        _acnet_kernel,
        out_shape=jax.ShapeDtypeStruct((B, 3), jnp.float32),
        in_specs=in_specs,
        out_specs=vmem_spec,
    )(*operands)

    mu = packed[:, 0:1]
    sigma = packed[:, 1:2]
    v = packed[:, 2:3]
    return mu, sigma, v


def init_params(key, state_size, hidden_size, action_size=3):
    """Deterministic parameter init; weights stored as [in, out]."""
    def linear(k, fan_in, fan_out, bias=True):
        kw, kb = jax.random.split(k)
        bound = 1.0 / jnp.sqrt(jnp.float32(fan_in))
        w = jax.random.uniform(kw, (fan_in, fan_out), jnp.float32, -bound, bound)
        b = (jax.random.uniform(kb, (1, fan_out), jnp.float32, -bound, bound)
             if bias else None)
        return w, b

    keys = jax.random.split(key, 9)
    p = {}
    p["w1"], p["b1"] = linear(keys[0], state_size, hidden_size)
    p["w2"], p["b2"] = linear(keys[1], hidden_size, hidden_size)
    p["wo1"], _ = linear(keys[2], hidden_size, action_size, bias=False)
    p["wu"], _ = linear(keys[3], action_size, 1, bias=False)
    p["wf1"], p["bf1"] = linear(keys[4], 1 + 2, hidden_size)
    p["wf2"], p["bf2"] = linear(keys[5], hidden_size, hidden_size)
    p["wmu"], p["bmu"] = linear(keys[6], hidden_size, 1)
    p["wsig"], p["bsig"] = linear(keys[7], hidden_size, 1)
    p["wv"], p["bv"] = linear(keys[8], hidden_size, 1)
    return p


def reference_forward(x, x_prime, p, K_static, K_domain, Sigma_domain):
    """Pure-JAX reference mirroring the PyTorch forward exactly."""
    h = jax.nn.sigmoid(x @ p["w1"] + p["b1"])
    h = jax.nn.sigmoid(h @ p["w2"] + p["b2"])
    pid = K_static + K_domain * jnp.tanh(h @ p["wo1"])
    u = pid @ p["wu"]
    xs = jnp.concatenate([u, x_prime], axis=1)
    xs = jax.nn.sigmoid(xs @ p["wf1"] + p["bf1"])
    xs = jax.nn.sigmoid(xs @ p["wf2"] + p["bf2"])
    mu = xs @ p["wmu"] + p["bmu"]
    sigma = Sigma_domain * (1.0 + jnp.tanh(xs @ p["wsig"] + p["bsig"]))
    v = xs @ p["wv"] + p["bv"]
    return mu, sigma, v


if __name__ == "__main__":
    B, STATE_SIZE, HIDDEN_SIZE = 2, 4, 32
    K_STATIC, K_DOMAIN, SIGMA_DOMAIN = 0.5, 2.0, 0.01

    key = jax.random.PRNGKey(0)
    kx, kxp, kp = jax.random.split(key, 3)
    x = jax.random.normal(kx, (B, STATE_SIZE), jnp.float32)
    x_prime = jax.random.normal(kxp, (B, 2), jnp.float32)
    params = init_params(kp, STATE_SIZE, HIDDEN_SIZE)

    mu, sigma, v = actor_critic_forward(
        x, x_prime, params,
        K_static=K_STATIC, K_domain=K_DOMAIN, Sigma_domain=SIGMA_DOMAIN)
    jax.block_until_ready((mu, sigma, v))

    mu_r, sig_r, v_r = reference_forward(
        x, x_prime, params, K_STATIC, K_DOMAIN, SIGMA_DOMAIN)

    assert mu.shape == (B, 1) and sigma.shape == (B, 1) and v.shape == (B, 1)
    assert jnp.allclose(mu, mu_r, atol=1e-5)
    assert jnp.allclose(sigma, sig_r, atol=1e-5)
    assert jnp.allclose(v, v_r, atol=1e-5)
    print("KERNEL_OK")
</pallas_src>

<mosaic_0001>
module attributes {stable_mosaic.version = 11 : i64} {
  func.func @_acnet_kernel(%arg0: memref<3xf32, #tpu.memory_space<smem>>, %arg1: memref<2x4xf32, #tpu.memory_space<vmem>>, %arg2: memref<2x2xf32, #tpu.memory_space<vmem>>, %arg3: memref<4x32xf32, #tpu.memory_space<vmem>>, %arg4: memref<32x32xf32, #tpu.memory_space<vmem>>, %arg5: memref<32x3xf32, #tpu.memory_space<vmem>>, %arg6: memref<3x32xf32, #tpu.memory_space<vmem>>, %arg7: memref<2x32xf32, #tpu.memory_space<vmem>>, %arg8: memref<32x32xf32, #tpu.memory_space<vmem>>, %arg9: memref<32x3xf32, #tpu.memory_space<vmem>>, %arg10: memref<5x32xf32, #tpu.memory_space<vmem>>, %arg11: memref<2x3xf32, #tpu.memory_space<vmem>>) attributes {dimension_semantics = [], scalar_prefetch = 0 : i64, scratch_operands = 0 : i64, tpu.core_type = #tpu.core_type<tc>} {
    %c0 = arith.constant 0 : index
    %0 = memref.load %arg0[%c0] : memref<3xf32, #tpu.memory_space<smem>>
    %c1 = arith.constant 1 : index
    %1 = memref.load %arg0[%c1] : memref<3xf32, #tpu.memory_space<smem>>
    %c2 = arith.constant 2 : index
    %2 = memref.load %arg0[%c2] : memref<3xf32, #tpu.memory_space<smem>>
    %c0_0 = arith.constant 0 : index
    %c0_1 = arith.constant 0 : index
    %3 = vector.load %arg1[%c0_0, %c0_1] : memref<2x4xf32, #tpu.memory_space<vmem>>, vector<2x4xf32>
    %c0_2 = arith.constant 0 : index
    %c0_3 = arith.constant 0 : index
    %4 = vector.load %arg2[%c0_2, %c0_3] : memref<2x2xf32, #tpu.memory_space<vmem>>, vector<2x2xf32>
    %c0_4 = arith.constant 0 : index
    %c0_5 = arith.constant 0 : index
    %5 = vector.load %arg10[%c0_4, %c0_5] : memref<5x32xf32, #tpu.memory_space<vmem>>, vector<5x32xf32>
    %c0_6 = arith.constant 0 : index
    %c0_7 = arith.constant 0 : index
    %6 = vector.load %arg3[%c0_6, %c0_7] : memref<4x32xf32, #tpu.memory_space<vmem>>, vector<4x32xf32>
    %cst = arith.constant dense<0.000000e+00> : vector<2x32xf32>
    %7 = tpu.matmul %3, %6, %cst {dimension_numbers = #tpu.dot_dimension_numbers<[1], [0], [0], [1], [0, 0, 1, 1], [], []>} : vector<2x4xf32>, vector<4x32xf32>, vector<2x32xf32> -> vector<2x32xf32>
    %8 = vector.extract_strided_slice %5 {offsets = [0, 0], sizes = [1, 32], strides = [1, 1]} : vector<5x32xf32> to vector<1x32xf32>
    %9 = vector.broadcast %8 : vector<1x32xf32> to vector<2x32xf32>
    %10 = arith.addf %7, %9 : vector<2x32xf32>
    %11 = arith.negf %10 : vector<2x32xf32>
    %12 = math.exp %11 : vector<2x32xf32>
    %cst_8 = arith.constant 1.000000e+00 : f32
    %13 = vector.broadcast %cst_8 : f32 to vector<2x32xf32>
    %14 = arith.addf %13, %12 : vector<2x32xf32>
    %15 = arith.divf %13, %14 : vector<2x32xf32>
    %c0_9 = arith.constant 0 : index
    %c0_10 = arith.constant 0 : index
    %16 = vector.load %arg4[%c0_9, %c0_10] : memref<32x32xf32, #tpu.memory_space<vmem>>, vector<32x32xf32>
    %cst_11 = arith.constant dense<0.000000e+00> : vector<2x32xf32>
    %17 = tpu.matmul %15, %16, %cst_11 {dimension_numbers = #tpu.dot_dimension_numbers<[1], [0], [0], [1], [0, 0, 1, 1], [], []>} : vector<2x32xf32>, vector<32x32xf32>, vector<2x32xf32> -> vector<2x32xf32>
    %18 = vector.extract_strided_slice %5 {offsets = [1, 0], sizes = [1, 32], strides = [1, 1]} : vector<5x32xf32> to vector<1x32xf32>
    %19 = vector.broadcast %18 : vector<1x32xf32> to vector<2x32xf32>
    %20 = arith.addf %17, %19 : vector<2x32xf32>
    %21 = arith.negf %20 : vector<2x32xf32>
    %22 = math.exp %21 : vector<2x32xf32>
    %cst_12 = arith.constant 1.000000e+00 : f32
    %23 = vector.broadcast %cst_12 : f32 to vector<2x32xf32>
    %24 = arith.addf %23, %22 : vector<2x32xf32>
    %25 = arith.divf %23, %24 : vector<2x32xf32>
    %c0_13 = arith.constant 0 : index
    %c0_14 = arith.constant 0 : index
    %26 = vector.load %arg5[%c0_13, %c0_14] : memref<32x3xf32, #tpu.memory_space<vmem>>, vector<32x3xf32>
    %cst_15 = arith.constant dense<0.000000e+00> : vector<2x3xf32>
    %27 = tpu.matmul %25, %26, %cst_15 {dimension_numbers = #tpu.dot_dimension_numbers<[1], [0], [0], [1], [0, 0, 1, 1], [], []>} : vector<2x32xf32>, vector<32x3xf32>, vector<2x3xf32> -> vector<2x3xf32>
    %28 = math.tanh %27 : vector<2x3xf32>
    %29 = vector.broadcast %1 : f32 to vector<2x3xf32>
    %30 = arith.mulf %29, %28 : vector<2x3xf32>
    %31 = vector.broadcast %0 : f32 to vector<2x3xf32>
    %32 = arith.addf %31, %30 : vector<2x3xf32>
    %c0_16 = arith.constant 0 : index
    %c0_17 = arith.constant 0 : index
    %33 = vector.load %arg6[%c0_16, %c0_17] : memref<3x32xf32, #tpu.memory_space<vmem>>, vector<3x32xf32>
    %cst_18 = arith.constant dense<0.000000e+00> : vector<2x32xf32>
    %34 = tpu.matmul %32, %33, %cst_18 {dimension_numbers = #tpu.dot_dimension_numbers<[1], [0], [0], [1], [0, 0, 1, 1], [], []>} : vector<2x3xf32>, vector<3x32xf32>, vector<2x32xf32> -> vector<2x32xf32>
    %c0_19 = arith.constant 0 : index
    %c0_20 = arith.constant 0 : index
    %35 = vector.load %arg7[%c0_19, %c0_20] : memref<2x32xf32, #tpu.memory_space<vmem>>, vector<2x32xf32>
    %cst_21 = arith.constant dense<0.000000e+00> : vector<2x32xf32>
    %36 = tpu.matmul %4, %35, %cst_21 {dimension_numbers = #tpu.dot_dimension_numbers<[1], [0], [0], [1], [0, 0, 1, 1], [], []>} : vector<2x2xf32>, vector<2x32xf32>, vector<2x32xf32> -> vector<2x32xf32>
    %37 = arith.addf %34, %36 : vector<2x32xf32>
    %38 = vector.extract_strided_slice %5 {offsets = [2, 0], sizes = [1, 32], strides = [1, 1]} : vector<5x32xf32> to vector<1x32xf32>
    %39 = vector.broadcast %38 : vector<1x32xf32> to vector<2x32xf32>
    %40 = arith.addf %37, %39 : vector<2x32xf32>
    %41 = arith.negf %40 : vector<2x32xf32>
    %42 = math.exp %41 : vector<2x32xf32>
    %cst_22 = arith.constant 1.000000e+00 : f32
    %43 = vector.broadcast %cst_22 : f32 to vector<2x32xf32>
    %44 = arith.addf %43, %42 : vector<2x32xf32>
    %45 = arith.divf %43, %44 : vector<2x32xf32>
    %c0_23 = arith.constant 0 : index
    %c0_24 = arith.constant 0 : index
    %46 = vector.load %arg8[%c0_23, %c0_24] : memref<32x32xf32, #tpu.memory_space<vmem>>, vector<32x32xf32>
    %cst_25 = arith.constant dense<0.000000e+00> : vector<2x32xf32>
    %47 = tpu.matmul %45, %46, %cst_25 {dimension_numbers = #tpu.dot_dimension_numbers<[1], [0], [0], [1], [0, 0, 1, 1], [], []>} : vector<2x32xf32>, vector<32x32xf32>, vector<2x32xf32> -> vector<2x32xf32>
    %48 = vector.extract_strided_slice %5 {offsets = [3, 0], sizes = [1, 32], strides = [1, 1]} : vector<5x32xf32> to vector<1x32xf32>
    %49 = vector.broadcast %48 : vector<1x32xf32> to vector<2x32xf32>
    %50 = arith.addf %47, %49 : vector<2x32xf32>
    %51 = arith.negf %50 : vector<2x32xf32>
    %52 = math.exp %51 : vector<2x32xf32>
    %cst_26 = arith.constant 1.000000e+00 : f32
    %53 = vector.broadcast %cst_26 : f32 to vector<2x32xf32>
    %54 = arith.addf %53, %52 : vector<2x32xf32>
    %55 = arith.divf %53, %54 : vector<2x32xf32>
    %c0_27 = arith.constant 0 : index
    %c0_28 = arith.constant 0 : index
    %56 = vector.load %arg9[%c0_27, %c0_28] : memref<32x3xf32, #tpu.memory_space<vmem>>, vector<32x3xf32>
    %cst_29 = arith.constant dense<0.000000e+00> : vector<2x3xf32>
    %57 = tpu.matmul %55, %56, %cst_29 {dimension_numbers = #tpu.dot_dimension_numbers<[1], [0], [0], [1], [0, 0, 1, 1], [], []>} : vector<2x32xf32>, vector<32x3xf32>, vector<2x3xf32> -> vector<2x3xf32>
    %58 = vector.extract_strided_slice %5 {offsets = [4, 0], sizes = [1, 3], strides = [1, 1]} : vector<5x32xf32> to vector<1x3xf32>
    %59 = vector.broadcast %58 : vector<1x3xf32> to vector<2x3xf32>
    %60 = arith.addf %57, %59 : vector<2x3xf32>
    %61 = math.tanh %60 : vector<2x3xf32>
    %62 = tpu.iota {dimensions = array<i32: 1>} : vector<2x3xi32>
    %c1_i32 = arith.constant 1 : i32
    %63 = vector.broadcast %c1_i32 : i32 to vector<2x3xi32>
    %64 = arith.cmpi eq, %62, %63 : vector<2x3xi32>
    %cst_30 = arith.constant 1.000000e+00 : f32
    %65 = vector.broadcast %cst_30 : f32 to vector<2x3xf32>
    %66 = arith.addf %65, %61 : vector<2x3xf32>
    %67 = vector.broadcast %2 : f32 to vector<2x3xf32>
    %68 = arith.mulf %67, %66 : vector<2x3xf32>
    %69 = arith.select %64, %68, %60 : vector<2x3xi1>, vector<2x3xf32>
    %c0_31 = arith.constant 0 : index
    %c0_32 = arith.constant 0 : index
    %70 = vector.load %arg11[%c0_31, %c0_32] : memref<2x3xf32, #tpu.memory_space<vmem>>, vector<2x3xf32>
    tpu.vector_store %arg11[%c0_31, %c0_32], %69 {strides = array<i32>} : memref<2x3xf32, #tpu.memory_space<vmem>>, vector<2x3xf32>,
    return
  }
}

</mosaic_0001>

<bundles_post_ra>
// kernel: tpu_custom_call.1
= control target key start
LH: loop header
LB: loop body
LE: loop exit
PB: predicated region body
PF: predicated region fallthrough
CT: control target
= control target key end

     0   :  { %16 = vsyncpa [#allocation5], 0  ;;  %s1159_s0 = inlined_call_operand.hbm [shape: f32[3], index: 0, kind: input, shape index: {}]   ;;  %s1160_s1 = inlined_call_operand.vmem [shape: f32[2,4], index: 1, kind: input, shape index: {}]   ;;  %s1161_s2 = inlined_call_operand.hbm [shape: f32[2,2], index: 2, kind: input, shape index: {}]   ;;  %s1162_s3 = inlined_call_operand.hbm [shape: f32[4,32], index: 3, kind: input, shape index: {}]   ;;  %s1163_s4 = inlined_call_operand.vmem [shape: f32[32,32], index: 4, kind: input, shape index: {}]   ;;  %s1164_s5 = inlined_call_operand.vmem [shape: f32[32,3], index: 5, kind: input, shape index: {}]   ;;  %s1165_s6 = inlined_call_operand.vmem [shape: f32[3,32], index: 6, kind: input, shape index: {}]   ;;  %s1166_s7 = inlined_call_operand.vmem [shape: f32[2,32], index: 7, kind: input, shape index: {}]   ;;  %s1167_s8 = inlined_call_operand.vmem [shape: f32[32,32], index: 8, kind: input, shape index: {}]   ;;  %s1168_s9 = inlined_call_operand.vmem [shape: f32[32,3], index: 9, kind: input, shape index: {}]   ;;  %s1169_s10 = inlined_call_operand.vmem [shape: f32[5,32], index: 10, kind: input, shape index: {}]   ;;  %s1170_s11 = inlined_call_operand.hbm [shape: f32[2,3], index: 11, kind: output, shape index: {}]  }
   0x1   :  { %17 = vsyncpa [#allocation3], 0 }
   0x2   :  { %18 = vsyncpa [#allocation8], 0 }
   0x3   :  { %19 = vsyncpa [#allocation4], 0  ;;  %s855_s19 = scalar_lea.hbm %s1159_s0, 16 }
   0x4   :  { %p856_p0 = scmp.ne.s32.totalorder %s1159_s0, %s855_s19  ;;  %p859_p1 = scmp.lt.u32.totalorder %s855_s19, %s1159_s0 }
   0x6   :  { %p861_p2 = pnand %p859_p1, %p856_p0 }
   0x8   :  { %864 = shalt.err (!%p861_p2)
}
   0x9   :  { %s939_s24 = smov [#allocation2]   ;;  %s940_s27 = smov [#allocation6]  }
   0xa   :  { %27 = dma.hbm_to_smem %s1159_s0, 16, %s939_s24, [#allocation5]  }
   0xb   :  { %s36_s28 = sshll.u32 %s940_s27, 4  ;;  %s941_s29 = smov [#allocation7]   ;;  %s37_s28 = int_to_ptr.vmem [resolvable:$true] %s36_s28 }
   0xc   :  { %s46_s30 = sshll.u32 %s941_s29, 4  ;;  %s865_s14 = scalar_lea.hbm %s1161_s2, 32  ;;  %s47_s30 = int_to_ptr.vmem [resolvable:$true] %s46_s30 }
   0xd   :  { %p866_p3 = scmp.ne.s32.totalorder %s1161_s2, %s865_s14  ;;  %p869_p4 = scmp.lt.u32.totalorder %s865_s14, %s1161_s2 }
   0xf   :  { %p871_p5 = pnand %p869_p4, %p866_p3 }
  0x11   :  { %874 = shalt.err (!%p871_p5)
}
  0x12   :  { %s875_s0 = scalar_lea.vmem %s37_s28, 32  ;;  %p880_p7 = scmp.lt.s32.totalorder %s37_s28, %s37_s28 }
  0x13   :  { %p876_p6 = scmp.ne.s32.totalorder %s37_s28, %s875_s0  ;;  %p881_p8 = scmp.lt.s32.totalorder %s875_s0, %s875_s0 }
  0x15   :  { %p882_p9 = por %p881_p8, %p880_p7 }
  0x17   :  { %p883_p10 = pnand %p882_p9, %p876_p6 }
  0x19   :  { %886 = shalt.err (!%p883_p10)
}
  0x1a   :  { %39 = dma.hbm_to_vmem [thread:$0]  %s1161_s2, 32, %s37_s28, [#allocation3]  }
  0x1b   :  { %s887_s23 = scalar_lea.hbm %s1162_s3, 64 }
  0x1c   :  { %p888_p11 = scmp.ne.s32.totalorder %s1162_s3, %s887_s23  ;;  %p891_p12 = scmp.lt.u32.totalorder %s887_s23, %s1162_s3 }
  0x1e   :  { %p893_p13 = pnand %p891_p12, %p888_p11 }
  0x20   :  { %896 = shalt.err (!%p893_p13)
}
  0x21   :  { %s897_s29 = scalar_lea.vmem %s47_s30, 64  ;;  %p902_p1 = scmp.lt.s32.totalorder %s47_s30, %s47_s30 }
  0x22   :  { %p898_p0 = scmp.ne.s32.totalorder %s47_s30, %s897_s29  ;;  %p903_p2 = scmp.lt.s32.totalorder %s897_s29, %s897_s29 }
  0x24   :  { %p904_p3 = por %p903_p2, %p902_p1 }
  0x26   :  { %p905_p4 = pnand %p904_p3, %p898_p0 }
  0x28   :  { %908 = shalt.err (!%p905_p4)
}
  0x29   :  { %49 = dma.hbm_to_vmem [thread:$0]  %s1162_s3, 64, %s47_s30, [#allocation8]  }
  0x2a   :  { %931 = dma.done.wait [#allocation5], 16  }
  0x2b   :  { %932 = vsyncadd [#allocation5], 4294967280 }
  0x2c   :  { %933 = dma.done.wait [#allocation3], 32  }
  0x2d   :  { %934 = vsyncadd [#allocation3], 4294967264 }
  0x2e   :  { %935 = dma.done.wait [#allocation8], 64  }
  0x2f   :  { %936 = vsyncadd [#allocation8], 4294967232 }
  0x30   :  { %73 = sfence }
  0x31   :  { %v80_v0 = vld [vmem:[#allocation7] sm:$0xf]  ;;  %vm89_vm0 = vcmask 1043456   ;;  %vm85_vm1 = vcmask 31744   ;;  %v942_v1 = vmov 0.0   ;;  %vm943_vm2 = vmmov 0  }
  0x32   :  { %745 = vmatprep.subr.mxu0 %v942_v1  ;;  %747 = vmatprep.mubr.msk.f32.mxu0 %vm943_vm2, %v942_v1  ;;  %v77_v2 = vld [vmem:[%s1160_s1] sm:$0x3]  ;;  %v170_v4 = vld [vmem:[%s1163_s4 + $0x8] sm:$0xff]  ;;  %v171_v5 = vld [vmem:[%s1163_s4 + $0x10] sm:$0xff]  ;;  %v944_v6 = vmov 0.0|0.0   ;;  %v81_v10 = vlaneseq  ;;  %vm177_vm3 = vcmask 261120  }
  0x33   :  { %746 = vmatpush3.msk.msra.mxu0 %vm89_vm0, %v80_v0  ;;  %758 = vmatprep.mubr.msk.f32.mxu1 %vm943_vm2, %v942_v1  ;;  %v169_v3 = vld [vmem:[%s1163_s4] sm:$0xff]  ;;  %v172_v8 = vld [vmem:[%s1163_s4 + $0x18] sm:$0xff]  ;;  %v258_v23 = vld [vmem:[%s1164_s5 + $0x8] sm:$0xff]  ;;  %vm345_vm4 = vcmask 1041408   ;;  %vm423_vm5 = vcmask 1042432   ;;  %vm341_vm6 = vcmask 15360  }
  0x34   :  { %748 = vmatmul.mubr.msk.f32.vlgmr.msra.gmra.mrb[0].mxu0 %vm85_vm1, %v77_v2  ;;  %804 = vmatprep.subr.bf16.mxu1 %v944_v6  ;;  %v805_v7 = vpack.c.bf16 %v170_v4, %v169_v3  ;;  %v808_v9 = vpack.c.bf16 %v172_v8, %v171_v5  ;;  %v1069_v11 = vshrl.u32 %v81_v10, 7  ;;  %v1075_v13 = vld [vmem:[%s1169_s10] sm:$0x1f]  ;;  %v259_v24 = vld [vmem:[%s1164_s5 + $0x10] sm:$0xff]  ;;  %v260_v26 = vld [vmem:[%s1164_s5 + $0x18] sm:$0xff]  ;;  %s74_s2 = sld [smem:[#allocation2]] }
  0x35   :  { %769 = vmatprep.mubr.msk.f32.mxu0 %vm943_vm2, %v942_v1  ;;  %810 = vmatprep.subr.bf16.mxu0 %v944_v6  ;;  %v257_v22 = vld [vmem:[%s1164_s5] sm:$0xff]  ;;  %v814_v27 = vpack.c.bf16 %v260_v26, %v259_v24  ;;  %vm419_vm7 = vcmask 23552   ;;  %v509_v50 = vld [vmem:[%s1167_s8 + $0x8] sm:$0xff]  ;;  %v510_v51 = vld [vmem:[%s1167_s8 + $0x10] sm:$0xff]  ;;  %v678_v24 = vand.u32 127, %v81_v10  ;;  %s945_s10 = smov [#allocation9]  }
  0x36   :  { %806 = vmatpush3.bf16.msra.mxu1 %v805_v7  ;;  %v83_v12 = vsub.s32 0, %v1069_v11  ;;  %v811_v25 = vpack.c.bf16 %v258_v23, %v257_v22  ;;  %v175_v28 = vsub.s32 1, %v1069_v11  ;;  %v340_v37 = vld [vmem:[%s1166_s7] sm:$0x3]  ;;  %s703_s7 = sld [smem:[#allocation2 + $0x1]]  ;;  %v511_v53 = vld [vmem:[%s1167_s8 + $0x18] sm:$0xff] }
  0x37   :  { %807 = vmatprep.subr.bf16.mxu1 %v944_v6  ;;  %v339_v38 = vld [vmem:[%s1165_s6] sm:$0x7]  ;;  %v820_v54 = vpack.c.bf16 %v511_v53, %v510_v51  ;;  %v499_v55 = vsub.s32 2, %v1069_v11  ;;  %v596_v2 = vld [vmem:[%s1168_s9 + $0x8] sm:$0xff]  ;;  %v597_v3 = vld [vmem:[%s1168_s9 + $0x10] sm:$0xff]  ;;  %v514_v8 = vsub.s32 3, %v1069_v11 }
  0x38   :  { %v84_v14 = vrot.slane %v1075_v13, %v83_v12  ;;  %812 = vmatpush3.bf16.msra.mxu0 %v811_v25  ;;  %v176_v29 = vrot.slane %v1075_v13, %v175_v28  ;;  %v78_v39 = vld [vmem:[#allocation6] sm:$0x3]  ;;  %v598_v5 = vld [vmem:[%s1168_s9 + $0x18] sm:$0xff]  ;;  %s692_s20 = sshll.u32 %s945_s10, 4  ;;  %vm679_vm8 = vcmp.eq.s32.totalorder %v678_v24, 1  ;;  %vm684_vm9 = vcmask 17408   ;;  %s693_s20 = int_to_ptr.vmem [resolvable:$true] %s692_s20 }
  0x39   :  { %813 = vmatprep.subr.bf16.mxu0 %v944_v6  ;;  %v508_v49 = vld [vmem:[%s1167_s8] sm:$0xff]  ;;  %v500_v56 = vrot.slane %v1075_v13, %v499_v55  ;;  %v826_v7 = vpack.c.bf16 %v598_v5, %v597_v3  ;;  %s909_s21 = scalar_lea.vmem %s693_s20, 32  ;;  %p914_p6 = scmp.lt.s32.totalorder %s693_s20, %s693_s20 }
  0x3a   :  { %809 = vmatpush3.bf16.msra.mxu1 %v808_v9  ;;  %v337_v44 = vstv %s74_s2  ;;  %v817_v52 = vpack.c.bf16 %v509_v50, %v508_v49  ;;  %v515_v9 = vrot.slane %v1075_v13, %v514_v8  ;;  %p910_p5 = scmp.ne.s32.totalorder %s693_s20, %s909_s21  ;;  %p915_p7 = scmp.lt.s32.totalorder %s909_s21, %s909_s21 }
  0x3b   :  { %772 = vmatprep.subr.mxu1 %v942_v1 }
  0x3c   :  { %815 = vmatpush3.bf16.msra.mxu0 %v814_v27  ;;  %v335_v42 = vstv %s703_s7  ;;  %p916_p8 = por %p915_p7, %p914_p6 }
  0x3d   :  { %777 = vmatprep.subr.mxu0 %v942_v1 }
  0x3e   :  { %p917_p9 = pnand %p916_p8, %p910_p5 }
 0x107   :  { %v159_v15 = vpop.f32.mrb[0].mxu0 }
 0x108   :  { %v160_v16 = vadd.f32 %v159_v15, %v84_v14  ;;  %v749_v17 = vpop.f32.mrb[1].mxu0 }
 0x10a   :  { %v707_v18 = vmul.f32 -1.442695, %v160_v16 }
 0x10c   :  { %835 = vpow2.f32 %v707_v18 }
 0x116   :  { %v836_v19 = vpop.eup %835 }
 0x117   :  { %v166_v20 = vadd.f32 1.0, %v836_v19 }
 0x119   :  { %837 = vrcp.f32 %v166_v20  ;;  %v601_v20 = vsub.s32 4, %v1069_v11 }
 0x123   :  { %v838_v21 = vpop.eup %837 }
 0x124   :  { %759 = vmatmul.mubr.msk.f32.vlgmr.msra.gmra.mrb[0].mxu1 %vm177_vm3, %v838_v21 }
 0x125   :  { %774 = vmatprep.mubr.msk.f32.mxu1 %vm943_vm2, %v942_v1  ;;  %773 = vmatpush3.msk.msra.mxu1 %vm345_vm4, %v340_v37 }
 0x126   :  { %816 = vmatprep.subr.bf16.mxu1 %v944_v6 }
 0x128   :  { %775 = vmatmul.mubr.msk.f32.vlgmr.msra.gmra.mrb[2].mxu1 %vm341_vm6, %v78_v39 }
 0x129   :  { %790 = vmatprep.mubr.msk.f32.mxu1 %vm943_vm2, %v942_v1  ;;  %818 = vmatpush3.bf16.msra.mxu1 %v817_v52 }
 0x12a   :  { %819 = vmatprep.subr.bf16.mxu1 %v944_v6 }
 0x12d   :  { %821 = vmatpush3.bf16.msra.mxu1 %v820_v54 }
 0x1f7   :  { %v247_v30 = vpop.f32.mrb[0].mxu1 }
 0x1f8   :  { %v248_v31 = vadd.f32 %v247_v30, %v176_v29  ;;  %v760_v32 = vpop.f32.mrb[1].mxu1 }
 0x1fa   :  { %v709_v33 = vmul.f32 -1.442695, %v248_v31 }
 0x1fb   :  { %v415_v47 = vpop.f32.mrb[2].mxu1 }
 0x1fc   :  { %839 = vpow2.f32 %v709_v33  ;;  %v776_v48 = vpop.f32.mrb[3].mxu1 }
 0x206   :  { %v840_v34 = vpop.eup %839 }
 0x207   :  { %v254_v35 = vadd.f32 1.0, %v840_v34 }
 0x209   :  { %841 = vrcp.f32 %v254_v35 }
 0x213   :  { %v842_v36 = vpop.eup %841 }
 0x214   :  { %770 = vmatmul.mubr.msk.f32.vlgmr.msra.gmra.mrb[2].mxu0 %vm177_vm3, %v842_v36 }
 0x215   :  { %779 = vmatprep.mubr.msk.f32.mxu0 %vm943_vm2, %v942_v1  ;;  %778 = vmatpush3.msk.msra.mxu0 %vm423_vm5, %v339_v38 }
 0x216   :  { %822 = vmatprep.subr.bf16.mxu0 %v944_v6 }
 0x2e7   :  { %v330_v40 = vpop.f32.mrb[2].mxu0 }
 0x2e8   :  { %843 = vtanh.f32 %v330_v40  ;;  %v771_v41 = vpop.f32.mrb[3].mxu0 }
 0x2f2   :  { %v844_v43 = vpop.eup %843 }
 0x2f3   :  { %v336_v45 = vmul.f32 %v844_v43, %v335_v42 }
 0x2f5   :  { %v338_v46 = vadd.f32 %v337_v44, %v336_v45 }
 0x2f7   :  { %780 = vmatmul.mubr.msk.f32.vlgmr.msra.gmra.mrb[4].mxu0 %vm419_vm7, %v338_v46 }
 0x2f8   :  { %801 = vmatprep.mubr.msk.f32.mxu0 %vm943_vm2, %v942_v1  ;;  %v595_v1 = vld [vmem:[%s1168_s9] sm:$0xff]  ;;  %s704_s9 = sld [smem:[#allocation2 + $0x2]] }
 0x2f9   :  { %v823_v4 = vpack.c.bf16 %v596_v2, %v595_v1 }
 0x2fb   :  { %824 = vmatpush3.bf16.msra.mxu0 %v823_v4 }
 0x2fc   :  { %825 = vmatprep.subr.bf16.mxu0 %v944_v6  ;;  %v602_v6 = vrot.slane %v1075_v13, %v601_v20 }
 0x2fe   :  { %v681_v26 = vstv %s704_s9 }
 0x2ff   :  { %827 = vmatpush3.bf16.msra.mxu0 %v826_v7 }
 0x3ca   :  { %v493_v57 = vpop.f32.mrb[4].mxu0 }
 0x3cb   :  { %v494_v58 = vadd.f32 %v493_v57, %v415_v47  ;;  %v781_v59 = vpop.f32.mrb[5].mxu0 }
 0x3cd   :  { %v501_v60 = vadd.f32 %v500_v56, %v494_v58 }
 0x3cf   :  { %v715_v61 = vmul.f32 -1.442695, %v501_v60 }
 0x3d1   :  { %845 = vpow2.f32 %v715_v61 }
 0x3db   :  { %v846_v62 = vpop.eup %845 }
 0x3dc   :  { %v505_v63 = vadd.f32 1.0, %v846_v62 }
 0x3de   :  { %847 = vrcp.f32 %v505_v63 }
 0x3e8   :  { %v848_v0 = vpop.eup %847 }
 0x3e9   :  { %791 = vmatmul.mubr.msk.f32.vlgmr.msra.gmra.mrb[4].mxu1 %vm177_vm3, %v848_v0 }
 0x4bc   :  { %v585_v12 = vpop.f32.mrb[4].mxu1 }
 0x4bd   :  { %v586_v14 = vadd.f32 %v585_v12, %v515_v9  ;;  %v792_v15 = vpop.f32.mrb[5].mxu1 }
 0x4bf   :  { %v717_v16 = vmul.f32 -1.442695, %v586_v14 }
 0x4c1   :  { %849 = vpow2.f32 %v717_v16 }
 0x4cb   :  { %v850_v17 = vpop.eup %849 }
 0x4cc   :  { %v592_v18 = vadd.f32 1.0, %v850_v17 }
 0x4ce   :  { %851 = vrcp.f32 %v592_v18 }
 0x4d8   :  { %v852_v19 = vpop.eup %851 }
 0x4d9   :  { %802 = vmatmul.mubr.msk.f32.vlgmr.msra.gmra.mrb[6].mxu0 %vm177_vm3, %v852_v19 }
 0x5ac   :  { %v672_v21 = vpop.f32.mrb[6].mxu0 }
 0x5ad   :  { %v673_v22 = vadd.f32 %v672_v21, %v602_v6  ;;  %v803_v23 = vpop.f32.mrb[7].mxu0 }
 0x5af   :  { %853 = vtanh.f32 %v673_v22 }
 0x5b9   :  { %v854_v25 = vpop.eup %853 }
 0x5ba   :  { %v680_v27 = vadd.f32 1.0, %v854_v25 }
 0x5bc   :  { %v682_v28 = vmul.f32 %v681_v26, %v680_v27 }
 0x5be   :  { %v683_v29 = vsel %vm679_vm8, %v682_v28, %v673_v22 }
 0x5bf   :  { %685 = vst.msk [vmem:[#allocation9] sm:$0x3] %vm684_vm9, %v683_v29 }
 0x5c0   :  { %920 = shalt.err (!%p917_p9)
}
 0x5c1   :  { %s921_s24 = scalar_lea.hbm %s1170_s11, 32 }
 0x5c2   :  { %p922_p10 = scmp.ne.s32.totalorder %s1170_s11, %s921_s24  ;;  %p925_p11 = scmp.lt.u32.totalorder %s921_s24, %s1170_s11 }
 0x5c4   :  { %p927_p12 = pnand %p925_p11, %p922_p10 }
 0x5c6   :  { %930 = shalt.err (!%p927_p12)
}
 0x5c7   :  { %695 = dma.vmem_to_hbm [thread:$0]  %s693_s20, 32, %s1170_s11, [#allocation4]  }
 0x5c8   :  { %937 = dma.done.wait [#allocation4], 32  }
 0x5c9   :  { %938 = vsyncadd [#allocation4], 4294967264 }
 0x5ca   :  { %699 = vsyncpa [#allocation3], 1 }
 0x5cb   :  { %700 = vsyncpa [#allocation8], 1 }
 0x5cc   :  { %701 = vsyncpa [#allocation4], 1 }
 0x5cd   :  { %702 = vsyncpa [#allocation5], 1 }

</bundles_post_ra>
